<compile_context>
chip_gen: v7x
topology: tpu7x:2x2x1
jax: 0.10.0
libtpu: 0.0.40
codegen_flags: <defaults>
</compile_context>

<pallas_src>
import functools

import jax
import jax.numpy as jnp
from jax.experimental import pallas as pl
from jax.experimental.pallas import tpu as pltpu

_LANE = 128
_VMEM_LIMIT_BYTES = 32 * 1024 * 1024   # safe on v5e/v6e/v7x (<= v7x physical/2)
_TILE_BUDGET_BYTES = 8 * 1024 * 1024   # per-buffer budget (x + out rows), 2x buffered
_MAX_BLOCKDIAG_FT = 64                 # keeps kron(eye(128), w) weight <= 4 MiB f32


def _round_up(x, m):
    return ((x + m - 1) // m) * m


def _linkpred_kernel(x_ref, w_ref, b_ref, o_ref, *, precision):
    # x_ref: (TM, K) VMEM   w_ref: (K, N) VMEM   b_ref: (1, 1) SMEM
    # o_ref: (TM, N) VMEM  (N = 128 lane-dense path, N = 1 fallback path)
    logits = jnp.dot(x_ref[...], w_ref[...],
                     preferred_element_type=jnp.float32,
                     precision=precision)
    o_ref[...] = jax.nn.sigmoid(logits + b_ref[0, 0])


def _choose_rows_tile(rows, row_bytes_vmem, row_align):
    """Rows per block: as large as the VMEM budget allows (HBM-roofline DMAs),
    aligned for sublane packing, and split into >= 2 grid steps when possible
    so v7x's two TensorCores both get work on the 'parallel' axis."""
    budget_rows = _TILE_BUDGET_BYTES // max(1, row_bytes_vmem)
    budget_rows = max(row_align, (budget_rows // row_align) * row_align)
    if rows <= budget_rows:
        if rows >= 2 * row_align:
            return _round_up(pl.cdiv(rows, 2), row_align)   # 2 grid steps
        return rows                                         # full extent (legal)
    return budget_rows


def link_prediction(seq, weight, bias, *, precision=None):
    """seq: (..., ft_in). weight: (1, ft_in) (torch Linear layout). bias: (1,).
    Returns sigmoid(seq @ weight.T + bias) as float32 with shape (..., 1).

    `precision` is forwarded to the in-kernel dot; pass
    jax.lax.Precision.HIGHEST for strict f32 parity with torch at large ft_in
    (free on this memory-bound op)."""
    ft_in = seq.shape[-1]
    lead_shape = seq.shape[:-1]
    m = 1
    for d in lead_shape:
        m *= d
    if m == 0:
        return jnp.zeros(lead_shape + (1,), jnp.float32)

    # Streaming dtype: keep f32/bf16 native; other floats -> bf16 (halves HBM
    # reads); ints -> f32.  Accumulation/output is f32 regardless.
    if seq.dtype == jnp.float32 or seq.dtype == jnp.bfloat16:
        compute_dtype = seq.dtype
    elif jnp.issubdtype(seq.dtype, jnp.floating):
        compute_dtype = jnp.bfloat16
    else:
        compute_dtype = jnp.float32
    itemsize = jnp.dtype(compute_dtype).itemsize
    row_align = 16 if itemsize == 2 else 8      # sublane packing for bf16

    x2d = jnp.reshape(seq, (m, ft_in)).astype(compute_dtype)
    w_col = jnp.reshape(weight, (1, ft_in)).T.astype(compute_dtype)  # (ft_in, 1)
    b = jnp.reshape(bias, (1, 1)).astype(jnp.float32)                # SMEM scalar

    kernel = functools.partial(_linkpred_kernel, precision=precision)
    b_spec = pl.BlockSpec(memory_space=pltpu.MemorySpace.SMEM)
    params = pltpu.CompilerParams(dimension_semantics=("parallel",),
                                  vmem_limit_bytes=_VMEM_LIMIT_BYTES)

    use_lane_dense = (m % _LANE == 0) and (ft_in <= _MAX_BLOCKDIAG_FT)
    if use_lane_dense:
        # Lane-dense path: x -> (M/128, 128*ft_in) (free contiguous reshape),
        # weight -> block-diagonal (128*ft_in, 128); dot gives (TM, 128).
        rows = m // _LANE
        k_dim = _LANE * ft_in
        x_r = jnp.reshape(x2d, (rows, k_dim))
        w_bd = jnp.kron(jnp.eye(_LANE, dtype=compute_dtype), w_col)  # (K, 128)
        row_bytes = k_dim * itemsize + _LANE * 4      # input row + f32 out row
        tile = _choose_rows_tile(rows, row_bytes, row_align)
        out = pl.pallas_call(
            kernel,
            out_shape=jax.ShapeDtypeStruct((rows, _LANE), jnp.float32),
            grid=(pl.cdiv(rows, tile),),
            in_specs=[
                pl.BlockSpec((tile, k_dim), lambda i: (i, 0)),
                pl.BlockSpec((k_dim, _LANE), lambda i: (0, 0)),
                b_spec,
            ],
            out_specs=pl.BlockSpec((tile, _LANE), lambda i: (i, 0)),
            compiler_params=params,
        )(x_r, w_bd, b)
        out = jnp.reshape(out, (m, 1))
    else:
        # Fallback (ragged M or large ft_in): (TM, 1) output, no padding; the
        # ragged last block's OOB output rows are never written back.
        # TODO(synk): lane-dense relayout of the (TM,1) tile via XLU for the
        # large-ft_in case (output bytes are only 1/ft_in of input traffic).
        row_bytes = _round_up(ft_in, _LANE) * itemsize + _LANE * 4  # VMEM lane pad
        tile = _choose_rows_tile(m, row_bytes, row_align)
        out = pl.pallas_call(
            kernel,
            out_shape=jax.ShapeDtypeStruct((m, 1), jnp.float32),
            grid=(pl.cdiv(m, tile),),
            in_specs=[
                pl.BlockSpec((tile, ft_in), lambda i: (i, 0)),
                pl.BlockSpec((ft_in, 1), lambda i: (0, 0)),
                b_spec,
            ],
            out_specs=pl.BlockSpec((tile, 1), lambda i: (i, 0)),
            compiler_params=params,
        )(x2d, w_col, b)

    return jnp.reshape(out, lead_shape + (1,))


if __name__ == "__main__":
    ft_in = 32
    key = jax.random.PRNGKey(0)
    k_seq1, k_seq2, k_w, k_b = jax.random.split(key, 4)

    # "Linear(ft_in, 1)" parameters (torch layout: weight (1, ft_in), bias (1,))
    bound = 1.0 / (ft_in ** 0.5)
    weight = jax.random.uniform(k_w, (1, ft_in), minval=-bound, maxval=bound,
                                dtype=jnp.float32)
    bias = jax.random.uniform(k_b, (1,), minval=-bound, maxval=bound,
                              dtype=jnp.float32)

    # Case 1: small ragged batch (M=16, not a multiple of 128) -> fallback path.
    seq1 = jax.random.normal(k_seq1, (2, 8, ft_in), dtype=jnp.float32)
    # Case 2: M % 128 == 0 -> lane-dense block-diagonal path (2 grid steps).
    seq2 = jax.random.normal(k_seq2, (2, 1024, ft_in), dtype=jnp.float32)

    for seq in (seq1, seq2):
        preds = jax.block_until_ready(link_prediction(seq, weight, bias))
        ref = jax.nn.sigmoid(seq @ weight.T + bias)
        assert preds.shape == seq.shape[:-1] + (1,)
        assert jnp.allclose(preds, ref, atol=1e-5, rtol=1e-5), (
            float(jnp.max(jnp.abs(preds - ref))))
    print("KERNEL_OK")
</pallas_src>

<mosaic_0001>
module attributes {stable_mosaic.version = 11 : i64} {
  func.func @_linkpred_kernel(%arg0: i32, %arg1: memref<8x32xf32, #tpu.memory_space<vmem>>, %arg2: memref<32x1xf32, #tpu.memory_space<vmem>>, %arg3: memref<1x1xf32, #tpu.memory_space<smem>>, %arg4: memref<8x1xf32, #tpu.memory_space<vmem>>) attributes {dimension_semantics = [#tpu.dimension_semantics<parallel>], iteration_bounds = array<i64: 2>, scalar_prefetch = 0 : i64, scratch_operands = 0 : i64, tpu.core_type = #tpu.core_type<tc>, window_params = [{transform_indices = @transform_0, window_bounds = array<i64: 8, 32>}, {pipeline_mode = #tpu.pipeline_mode<synchronous>, transform_indices = @transform_1, window_bounds = array<i64: 32, 1>}, {transform_indices = @transform_2, window_bounds = array<i64: 1, 1>}, {transform_indices = @transform_3, window_bounds = array<i64: 8, 1>}]} {
    %c0 = arith.constant 0 : index
    %c0_0 = arith.constant 0 : index
    %0 = vector.load %arg1[%c0, %c0_0] : memref<8x32xf32, #tpu.memory_space<vmem>>, vector<8x32xf32>
    %c0_1 = arith.constant 0 : index
    %c0_2 = arith.constant 0 : index
    %1 = vector.load %arg2[%c0_1, %c0_2] : memref<32x1xf32, #tpu.memory_space<vmem>>, vector<32x1xf32>
    %cst = arith.constant dense<0.000000e+00> : vector<8x1xf32>
    %2 = tpu.matmul %0, %1, %cst {dimension_numbers = #tpu.dot_dimension_numbers<[1], [0], [0], [1], [0, 0, 1, 1], [], []>} : vector<8x32xf32>, vector<32x1xf32>, vector<8x1xf32> -> vector<8x1xf32>
    %c0_3 = arith.constant 0 : index
    %c0_4 = arith.constant 0 : index
    %3 = memref.load %arg3[%c0_3, %c0_4] : memref<1x1xf32, #tpu.memory_space<smem>>
    %4 = vector.broadcast %3 : f32 to vector<8x1xf32>
    %5 = arith.addf %2, %4 : vector<8x1xf32>
    %6 = arith.negf %5 : vector<8x1xf32>
    %7 = math.exp %6 : vector<8x1xf32>
    %cst_5 = arith.constant 1.000000e+00 : f32
    %8 = vector.broadcast %cst_5 : f32 to vector<8x1xf32>
    %9 = arith.addf %8, %7 : vector<8x1xf32>
    %10 = arith.divf %8, %9 : vector<8x1xf32>
    %c0_6 = arith.constant 0 : index
    %c0_7 = arith.constant 0 : index
    %11 = vector.load %arg4[%c0_6, %c0_7] : memref<8x1xf32, #tpu.memory_space<vmem>>, vector<8x1xf32>
    tpu.vector_store %arg4[%c0_6, %c0_7], %10 {strides = array<i32>} : memref<8x1xf32, #tpu.memory_space<vmem>>, vector<8x1xf32>,
    return
  }
  func.func @transform_0(%arg0: i32) -> (i32, i32) {
    %c0_i32 = arith.constant 0 : i32
    %c0_i32_0 = arith.constant 0 : i32
    return %arg0, %c0_i32 : i32, i32
  }
  func.func @transform_1(%arg0: i32) -> (i32, i32) {
    %c0_i32 = arith.constant 0 : i32
    %c0_i32_0 = arith.constant 0 : i32
    %c0_i32_1 = arith.constant 0 : i32
    return %c0_i32, %c0_i32_0 : i32, i32
  }
  func.func @transform_2(%arg0: i32) -> (i32, i32) {
    %c0_i32 = arith.constant 0 : i32
    %c0_i32_0 = arith.constant 0 : i32
    %c0_i32_1 = arith.constant 0 : i32
    return %c0_i32, %c0_i32_0 : i32, i32
  }
  func.func @transform_3(%arg0: i32) -> (i32, i32) {
    %c0_i32 = arith.constant 0 : i32
    %c0_i32_0 = arith.constant 0 : i32
    return %arg0, %c0_i32 : i32, i32
  }
}

</mosaic_0001>

<bundles_post_ra>
// kernel: tpu_custom_call.1
= control target key start
LH: loop header
LB: loop body
LE: loop exit
PB: predicated region body
PF: predicated region fallthrough
CT: control target
= control target key end

     0   :  { %s391_s14 = smov 0   ;;  %s420_s0 = inlined_call_operand.vmem [shape: f32[16,32], index: 0, kind: input, shape index: {}]   ;;  %s421_s1 = inlined_call_operand.vmem [shape: f32[32,1], index: 1, kind: input, shape index: {}]   ;;  %s422_s2 = inlined_call_operand.<no memory space> [shape: f32[1,1], index: 2, kind: input, shape index: {}]   ;;  %s423_s3 = inlined_call_operand.vmem [shape: f32[16,1], index: 3, kind: output, shape index: {}]  }
   0x1   :  { %8 = sst [smem:[#allocation2]] %s422_s2 }
   0x2 LB: > { %s309_s15 = sadd.s32 4294967295, %s363_s14   ;;  %p313_p0 = scmp.ge.s32.totalorder %s363_s14, 1  ;;  %s363_s14 = sphi %s391_s14, %s14_s14  }
   0x3   : > { %p137_p1 = scmp.lt.s32.totalorder %s363_s14, 3 }
   0x5   : > { %p138_p2 = pnand %p313_p0, %p137_p1 }
   0x6   : > { %v168_v0 = vld [vmem:[%s421_s1] sm:$0xff] (!%p138_p2)  ;;  %v169_v1 = vld [vmem:[%s421_s1 + $0x8] sm:$0xff] (!%p138_p2)  ;;  %v170_v2 = vld [vmem:[%s421_s1 + $0x10] sm:$0xff] (!%p138_p2)  ;;  %v365_v3 = vmov (!%p138_p2), 0.0|0.0   ;;  %vm366_vm0 = vmmov (!%p138_p2), 0   ;;  %v367_v6 = vmov (!%p138_p2), 0.0  }
   0x7   : > { %141 = sbr.rel (%p138_p2) target bundleno = 259 (0x103), region = 32  ;;  %336 = vmatprep.subr.bf16.mxu0 (!%p138_p2), %v365_v3  ;;  %v337_v4 = vpack.c.bf16 (!%p138_p2), %v169_v1, %v168_v0  ;;  %v171_v5 = vld [vmem:[%s421_s1 + $0x18] sm:$0xff] (!%p138_p2)  ;;  %333 = vmatprep.mubr.msk.f32.mxu0 (!%p138_p2), %vm366_vm0, %v367_v6  ;;  %p159_p3 = scmp.lt.s32.totalorder (!%p138_p2), %s309_s15, 1  ;;  %vm174_vm1 = vcmask (!%p138_p2), 261120   ;;  %vm254_vm2 = vcmask (!%p138_p2), 7168  }
   0x8   : > { %v340_v7 = vpack.c.bf16 (!%p138_p2), %v171_v5, %v170_v2  ;;  %s172_s27 = sld [smem:[#allocation2]] (!%p138_p2) }
   0x9   : > { %338 = vmatpush3.bf16.msra.mxu0 (!%p138_p2), %v337_v4 }
   0xa   : > { %339 = vmatprep.subr.bf16.mxu0 (!%p138_p2), %v365_v3 }
   0xd   : > { %341 = vmatpush3.bf16.msra.mxu0 (!%p138_p2), %v340_v7 }
   0xe   : > { %s425_s15 = smov (!%p159_p3, %s309_s15), 1  ;;  %v173_v9 = vstv %s172_s27 }
   0xf   : > { %s314_s23 = sshll.u32 %s425_s15, 3 }
  0x10   : > { %s162_s26 = scalar_lea.vmem %s420_s0, %s314_s23  ;;  %s166_s30 = scalar_lea.vmem %s423_s3, %s314_s23 }
  0x11   : > { %v167_v8 = vld [vmem:[%s162_s26] sm:$0xff] }
  0x12   : > { %334 = vmatmul.mubr.msk.f32.vlgmr.msra.gmra.mrb[0].mxu0 %vm174_vm1, %v167_v8 }
  0xe5   : > { %v244_v10 = vpop.f32.mrb[0].mxu0 }
  0xe6   : > { %v245_v11 = vadd.f32 %v244_v10, %v173_v9  ;;  %v335_v12 = vpop.f32.mrb[1].mxu0 }
  0xe8   : > { %v317_v13 = vmul.f32 -1.442695, %v245_v11 }
  0xea   : > { %353 = vpow2.f32 %v317_v13 }
  0xf4   : > { %v354_v14 = vpop.eup %353 }
  0xf5   : > { %v251_v15 = vadd.f32 1.0, %v354_v14 }
  0xf7   : > { %355 = vrcp.f32 %v251_v15 }
 0x101   : > { %v356_v16 = vpop.eup %355 }
 0x102   : > { %255 = vst.msk [vmem:[%s166_s30] sm:$0xff] %vm254_vm2, %v356_v16 }
 0x103 PF: > { %s14_s14 = sadd.s32 1, %s363_s14  }
 0x104   : > { %p11_p4 = scmp.ge.s32.totalorder %s14_s14, 4  }
 0x106   :  { %13 = sbr.rel (!%p11_p4) target bundleno = 2 (0x2), region = 62 }

</bundles_post_ra>
